<compile_context>
chip_gen: v7x
topology: tpu7x:2x2x1
jax: 0.10.0
libtpu: 0.0.40
codegen_flags: <defaults>
</compile_context>

<pallas_src>
import functools

import jax
import jax.numpy as jnp
import numpy as np
from jax.experimental import pallas as pl
from jax.experimental.pallas import tpu as pltpu


def _tv_block_kernel(x_ref, o_ref, *, w, rem, nb):
    """Per-block partial TV sums.

    x_ref : (TR, C) block; each row holds `th` consecutive image rows of one
            plane flattened along the lane axis (C = th * w).
    o_ref : (1, 2, 128) block; o[0,0,:] = sum|dh|, o[0,1,:] = sum|dv| of this
            block (scalar splat across 128 lanes -> dense, unmasked store).
    w     : image width (static).
    rem   : valid rows in the last block (0 means every block is full).
    nb    : number of grid blocks (static).
    """
    x = x_ref[...].astype(jnp.float32)              # upcast first (bf16-safe)
    tr, c = x.shape

    # Shifted operands via XLU rolls (jnp.roll semantics -> "next element").
    nxt1 = pltpu.roll(x, shift=(c - 1) % c, axis=1)  # lane k -> x[.., (k+1) % c]
    nxtw = pltpu.roll(x, shift=(c - w) % c, axis=1)  # lane k -> x[.., (k+w) % c]
    dh = jnp.abs(nxt1 - x)
    dv = jnp.abs(nxtw - x)

    def reduce_and_store(dh, dv):
        # Row-reduce first (VPU adds), then cheap O(C) per-lane masks and the
        # final cross-lane reduction to two scalars.
        dh_l = jnp.sum(dh, axis=0, keepdims=True)    # (1, C)
        dv_l = jnp.sum(dv, axis=0, keepdims=True)    # (1, C)
        col = jax.lax.broadcasted_iota(jnp.int32, (1, c), 1)
        h_ok = (col % w) != (w - 1)   # right neighbour exists in same image row
        v_ok = col < (c - w)          # partner row stays inside this chunk
        h_sum = jnp.sum(jnp.where(h_ok, dh_l, 0.0))
        v_sum = jnp.sum(jnp.where(v_ok, dv_l, 0.0))
        o_ref[0, 0, :] = jnp.broadcast_to(h_sum, (128,))
        o_ref[0, 1, :] = jnp.broadcast_to(v_sum, (128,))

    if rem == 0:
        reduce_and_store(dh, dv)
    else:
        # Ragged last block: mask the out-of-range (garbage) rows.  Only the
        # last block pays for this; all other blocks take the plain path.
        @pl.when(pl.program_id(0) != nb - 1)
        def _():
            reduce_and_store(dh, dv)

        @pl.when(pl.program_id(0) == nb - 1)
        def _():
            row = jax.lax.broadcasted_iota(jnp.int32, (tr, c), 0)
            keep = row < rem
            reduce_and_store(jnp.where(keep, dh, 0.0), jnp.where(keep, dv, 0.0))


def tv_loss(x, *, block_budget_bytes=None):
    """Total variation loss for an NCHW tensor, computed with a Pallas kernel."""
    assert x.ndim == 4, "expected NCHW input"
    n, ch, h, w = x.shape
    nc = n * ch
    itemsize = np.dtype(x.dtype).itemsize

    # --- Generation-aware block budget / VMEM limit (v7x has only 64 MiB).
    try:
        vmem_cap = pltpu.get_tpu_info().vmem_capacity_bytes
    except Exception:
        vmem_cap = 64 * 1024 * 1024                  # conservative fallback
    if block_budget_bytes is None:
        block_budget_bytes = (4 if vmem_cap <= 64 * 1024 * 1024 else 8) * 1024 * 1024
    vmem_limit = int(min(vmem_cap * 3 // 4, 96 * 1024 * 1024))

    # --- Chunking: th image rows per 2-D row, th | h, chosen so that >= 8
    # 2-D rows fit in one block (amortizes the per-block epilogue and lets
    # large planes (1080p / 4K f32) tile instead of blowing VMEM).
    max_chunk_elems = max(1, block_budget_bytes // (8 * itemsize))
    th = 1
    for d in range(1, h + 1):
        if h % d == 0 and w * d <= max_chunk_elems:
            th = d
    # TODO(synk): for pathological widths (w*itemsize > budget/8) a single chunk
    # row already exceeds the block budget; such shapes are not tiled further.
    c = w * th
    r = nc * (h // th)

    # --- Rows per block: fill the budget, keep a multiple of 8 (TPU sublane
    # tiling rule), and keep >= 2 blocks when possible so both v7x cores work.
    if r <= 8:
        tr = r
    else:
        tr = max(1, block_budget_bytes // (c * itemsize))
        tr = min(tr, (r + 1) // 2)
        tr = max(8, (tr // 8) * 8)
    nb = pl.cdiv(r, tr)
    rem = r % tr

    xf = x.reshape(r, c)                             # free reshape, no relayout

    kernel = functools.partial(_tv_block_kernel, w=w, rem=rem, nb=nb)
    part = pl.pallas_call(
        kernel,
        out_shape=jax.ShapeDtypeStruct((nb, 2, 128), jnp.float32),
        grid_spec=pltpu.PrefetchScalarGridSpec(
            num_scalar_prefetch=0,
            grid=(nb,),
            in_specs=[pl.BlockSpec((tr, c), lambda i: (i, 0))],
            out_specs=pl.BlockSpec((1, 2, 128), lambda i: (i, 0, 0)),
        ),
        compiler_params=pltpu.CompilerParams(
            dimension_semantics=("parallel",),       # no cross-step state
            vmem_limit_bytes=vmem_limit,
        ),
    )(xf)

    h_sum = jnp.sum(part[:, 0, 0])
    v_sum = jnp.sum(part[:, 1, 0])

    # Vertical pairs straddling a chunk boundary (last row of chunk j vs first
    # row of chunk j+1) are re-read here: ~1/th of the data, negligible for any
    # realistic plane size, and zero work when th == h (whole plane per chunk).
    if th < h:
        x3 = x.reshape(nc, h, w)
        bidx = np.arange(1, h // th) * th            # static row indices
        top = x3[:, bidx, :].astype(jnp.float32)
        bot = x3[:, bidx - 1, :].astype(jnp.float32)
        v_sum = v_sum + jnp.sum(jnp.abs(top - bot))

    # torch.mean denominators over the diff tensors.  (w == 1 or h == 1 gives
    # 0/0 -> NaN, matching torch.mean over an empty tensor.)
    h_tv = h_sum / jnp.float32(nc * h * (w - 1))
    v_tv = v_sum / jnp.float32(nc * (h - 1) * w)
    return (h_tv + v_tv).astype(x.dtype)


if __name__ == "__main__":
    def ref_tv(xx):
        xf = xx.astype(jnp.float32)
        h_ref = jnp.mean(jnp.abs(xf[:, :, :, 1:] - xf[:, :, :, :-1]))
        v_ref = jnp.mean(jnp.abs(xf[:, :, 1:, :] - xf[:, :, :-1, :]))
        return h_ref + v_ref

    # Primary check: shape implied by the module (batch=2, channels=4, 16x16).
    x = jax.random.normal(jax.random.PRNGKey(0), (2, 4, 16, 16), dtype=jnp.float32)
    loss = jax.jit(tv_loss)(x)
    jax.block_until_ready(loss)
    assert jnp.allclose(loss, ref_tv(x), rtol=1e-4, atol=1e-6), (loss, ref_tv(x))

    # Ragged last block + 2 grid blocks (nc = 10 -> row blocks of 8 + 2).
    x2 = jax.random.normal(jax.random.PRNGKey(1), (2, 5, 16, 16), dtype=jnp.float32)
    loss2 = tv_loss(x2)
    jax.block_until_ready(loss2)
    assert jnp.allclose(loss2, ref_tv(x2), rtol=1e-4, atol=1e-6), (loss2, ref_tv(x2))

    # Row-chunked path: tiny budget forces th < h + wrapper boundary fix-up.
    x3 = jax.random.normal(jax.random.PRNGKey(2), (2, 4, 64, 16), dtype=jnp.float32)
    loss3 = tv_loss(x3, block_budget_bytes=16 * 1024)
    jax.block_until_ready(loss3)
    assert jnp.allclose(loss3, ref_tv(x3), rtol=1e-4, atol=1e-6), (loss3, ref_tv(x3))

    print("KERNEL_OK")
</pallas_src>

<mosaic_0001>
module attributes {stable_mosaic.version = 11 : i64} {
  func.func @_tv_block_kernel(%arg0: i32, %arg1: memref<8x256xf32, #tpu.memory_space<vmem>>, %arg2: memref<1x2x128xf32, #tpu.memory_space<vmem>>) attributes {dimension_semantics = [#tpu.dimension_semantics<parallel>], iteration_bounds = array<i64: 1>, scalar_prefetch = 0 : i64, scratch_operands = 0 : i64, tpu.core_type = #tpu.core_type<tc>, window_params = [{transform_indices = @transform_0, window_bounds = array<i64: 8, 256>}, {transform_indices = @transform_1, window_bounds = array<i64: 1, 2, 128>}]} {
    %c0 = arith.constant 0 : index
    %c0_0 = arith.constant 0 : index
    %0 = vector.load %arg1[%c0, %c0_0] : memref<8x256xf32, #tpu.memory_space<vmem>>, vector<8x256xf32>
    %c255_i32 = arith.constant 255 : i32
    %1 = tpu.dynamic_rotate %0 by %c255_i32 dim 1 : vector<8x256xf32>, i32 -> vector<8x256xf32>
    %c240_i32 = arith.constant 240 : i32
    %2 = tpu.dynamic_rotate %0 by %c240_i32 dim 1 : vector<8x256xf32>, i32 -> vector<8x256xf32>
    %3 = arith.subf %1, %0 : vector<8x256xf32>
    %4 = math.absf %3 : vector<8x256xf32>
    %5 = arith.subf %2, %0 : vector<8x256xf32>
    %6 = math.absf %5 : vector<8x256xf32>
    %cst = arith.constant dense<0.000000e+00> : vector<256xf32>
    %7 = vector.multi_reduction <add>, %4, %cst [0] : vector<8x256xf32> to vector<256xf32>
    %8 = vector.shape_cast %7 : vector<256xf32> to vector<1x256xf32>
    %cst_1 = arith.constant dense<0.000000e+00> : vector<256xf32>
    %9 = vector.multi_reduction <add>, %6, %cst_1 [0] : vector<8x256xf32> to vector<256xf32>
    %10 = vector.shape_cast %9 : vector<256xf32> to vector<1x256xf32>
    %11 = tpu.iota {dimensions = array<i32: 1>} : vector<1x256xi32>
    %c16_i32 = arith.constant 16 : i32
    %c0_i32 = arith.constant 0 : i32
    %12 = arith.cmpi eq, %c16_i32, %c0_i32 : i32
    %c1_i32 = arith.constant 1 : i32
    %13 = arith.select %12, %c1_i32, %c16_i32 : i32
    %14 = vector.broadcast %13 : i32 to vector<1x256xi32>
    %15 = arith.remsi %11, %14 : vector<1x256xi32>
    %c0_i32_2 = arith.constant 0 : i32
    %16 = vector.broadcast %c0_i32_2 : i32 to vector<1x256xi32>
    %17 = arith.cmpi ne, %15, %16 : vector<1x256xi32>
    %c0_i32_3 = arith.constant 0 : i32
    %18 = vector.broadcast %c0_i32_3 : i32 to vector<1x256xi32>
    %19 = arith.cmpi slt, %15, %18 : vector<1x256xi32>
    %c0_i32_4 = arith.constant 0 : i32
    %20 = arith.cmpi slt, %13, %c0_i32_4 : i32
    %21 = vector.broadcast %20 : i1 to vector<1x256xi1>
    %22 = vector.broadcast %21 : vector<1x256xi1> to vector<1x256xi1>
    %23 = arith.xori %19, %22 : vector<1x256xi1>
    %24 = arith.andi %23, %17 : vector<1x256xi1>
    %25 = vector.broadcast %13 : i32 to vector<1x256xi32>
    %26 = arith.addi %15, %25 : vector<1x256xi32>
    %27 = arith.select %24, %26, %15 : vector<1x256xi1>, vector<1x256xi32>
    %c15_i32 = arith.constant 15 : i32
    %28 = vector.broadcast %c15_i32 : i32 to vector<1x256xi32>
    %29 = arith.cmpi ne, %27, %28 : vector<1x256xi32>
    %c240_i32_5 = arith.constant 240 : i32
    %30 = vector.broadcast %c240_i32_5 : i32 to vector<1x256xi32>
    %31 = arith.cmpi slt, %11, %30 : vector<1x256xi32>
    %cst_6 = arith.constant 0.000000e+00 : f32
    %32 = vector.broadcast %cst_6 : f32 to vector<1x256xf32>
    %33 = arith.select %29, %8, %32 : vector<1x256xi1>, vector<1x256xf32>
    %34 = vector.shape_cast %33 : vector<1x256xf32> to vector<1x1x256xf32>
    %cst_7 = arith.constant dense<0.000000e+00> : vector<1xf32>
    %35 = vector.multi_reduction <add>, %34, %cst_7 [1, 2] : vector<1x1x256xf32> to vector<1xf32>
    %36 = vector.shape_cast %35 : vector<1xf32> to vector<1x1x1xf32>
    %37 = vector.extract %36[0, 0, 0] : f32 from vector<1x1x1xf32>
    %cst_8 = arith.constant 0.000000e+00 : f32
    %38 = vector.broadcast %cst_8 : f32 to vector<1x256xf32>
    %39 = arith.select %31, %10, %38 : vector<1x256xi1>, vector<1x256xf32>
    %40 = vector.shape_cast %39 : vector<1x256xf32> to vector<1x1x256xf32>
    %cst_9 = arith.constant dense<0.000000e+00> : vector<1xf32>
    %41 = vector.multi_reduction <add>, %40, %cst_9 [1, 2] : vector<1x1x256xf32> to vector<1xf32>
    %42 = vector.shape_cast %41 : vector<1xf32> to vector<1x1x1xf32>
    %43 = vector.extract %42[0, 0, 0] : f32 from vector<1x1x1xf32>
    %44 = vector.broadcast %37 : f32 to vector<128xf32>
    %c0_10 = arith.constant 0 : index
    %c0_11 = arith.constant 0 : index
    %c0_12 = arith.constant 0 : index
    %45 = vector.load %arg2[%c0_10, %c0_11, %c0_12] : memref<1x2x128xf32, #tpu.memory_space<vmem>>, vector<1x1x128xf32>
    %46 = vector.shape_cast %45 : vector<1x1x128xf32> to vector<128xf32>
    %47 = vector.shape_cast %44 : vector<128xf32> to vector<1x1x128xf32>
    tpu.vector_store %arg2[%c0_10, %c0_11, %c0_12], %47 {strides = array<i32>} : memref<1x2x128xf32, #tpu.memory_space<vmem>>, vector<1x1x128xf32>,
    %48 = vector.broadcast %43 : f32 to vector<128xf32>
    %c0_13 = arith.constant 0 : index
    %c1 = arith.constant 1 : index
    %c0_14 = arith.constant 0 : index
    %49 = vector.load %arg2[%c0_13, %c1, %c0_14] : memref<1x2x128xf32, #tpu.memory_space<vmem>>, vector<1x1x128xf32>
    %50 = vector.shape_cast %49 : vector<1x1x128xf32> to vector<128xf32>
    %51 = vector.shape_cast %48 : vector<128xf32> to vector<1x1x128xf32>
    tpu.vector_store %arg2[%c0_13, %c1, %c0_14], %51 {strides = array<i32>} : memref<1x2x128xf32, #tpu.memory_space<vmem>>, vector<1x1x128xf32>,
    return
  }
  func.func @transform_0(%arg0: i32) -> (i32, i32) {
    %c0_i32 = arith.constant 0 : i32
    %c0_i32_0 = arith.constant 0 : i32
    return %arg0, %c0_i32 : i32, i32
  }
  func.func @transform_1(%arg0: i32) -> (i32, i32, i32) {
    %c0_i32 = arith.constant 0 : i32
    %c0_i32_0 = arith.constant 0 : i32
    %c0_i32_1 = arith.constant 0 : i32
    return %arg0, %c0_i32, %c0_i32_0 : i32, i32, i32
  }
}

</mosaic_0001>

<bundles_post_ra>
// kernel: tv_loss.1
= control target key start
LH: loop header
LB: loop body
LE: loop exit
PB: predicated region body
PF: predicated region fallthrough
CT: control target
= control target key end

     0   :  { %s130_s8 = smov 112   ;;  %s131_s9 = smov 127   ;;  %v14_v2 = vlaneseq  ;;  %vm89_vm3 = vcmask 1040384   ;;  %s154_s0 = inlined_call_operand.vmem [shape: f32[8,256], index: 0, kind: input, shape index: {}]   ;;  %s155_s1 = inlined_call_operand.vmem [shape: f32[1,2,128], index: 1, kind: output, shape index: {}]  }
   0x1   :  { %v8_v0 = vld [vmem:[%s154_s0] sm:$0xff]  ;;  %v9_v1 = vld [vmem:[%s154_s0 + $0x8] sm:$0xff] }
   0x2   :  { %19 = vrot.lane.b32.xlu1 %v8_v0, %s130_s8  ;;  %10 = vrot.lane.b32.xlu0 %v8_v0, %s131_s9  ;;  %v15_v3 = vand.u32 127, %v14_v2 }
   0x4   :  { %vm23_vm0 = vcmp.lt.s32.totalorder %v15_v3, 112  ;;  %vm16_vm1 = vcmp.lt.s32.totalorder %v15_v3, 127  ;;  %v58_v27 = vadd.s32 128, %v15_v3  ;;  %v63_v33 = vand.u32 15, %v15_v3 }
   0x6   :  { %21 = vrot.lane.b32.xlu1 %v9_v1, %s130_s8  ;;  %12 = vrot.lane.b32.xlu0 %v9_v1, %s131_s9  ;;  %v70_v37 = vand.u32 15, %v58_v27  ;;  %vm86_vm2 = vcmp.lt.s32.totalorder %v58_v27, 240  ;;  %vm83_vm4 = vcmp.ne.s32.totalorder %v63_v33, 15 }
   0x8   :  { %vm84_vm5 = vcmp.ne.s32.totalorder %v70_v37, 15 }
  0x74   :  { %v20_v4 = vpop.permute.xlu1 %19  ;;  %v11_v5 = vpop.permute.xlu0 %10 }
  0x78   :  { %v22_v6 = vpop.permute.xlu1 %21  ;;  %v13_v7 = vpop.permute.xlu0 %12 }
  0x79   :  { %v24_v8 = vsel %vm23_vm0, %v20_v4, %v22_v6  ;;  %v25_v9 = vsel %vm23_vm0, %v22_v6, %v20_v4  ;;  %v17_v10 = vsel %vm16_vm1, %v11_v5, %v13_v7  ;;  %v18_v11 = vsel %vm16_vm1, %v13_v7, %v11_v5 }
  0x7a   :  { %v30_v12 = vsub.f32 %v24_v8, %v8_v0  ;;  %v31_v13 = vsub.f32 %v25_v9, %v9_v1  ;;  %v26_v14 = vsub.f32 %v17_v10, %v8_v0  ;;  %v27_v15 = vsub.f32 %v18_v11, %v9_v1 }
  0x7c   :  { %v32_v16 = vand.u32 2147483647, %v30_v12  ;;  %v33_v17 = vand.u32 2147483647, %v31_v13  ;;  %v28_v18 = vand.u32 2147483647, %v26_v14 }
  0x7d   :  { %v29_v19 = vand.u32 2147483647, %v27_v15 }
  0x7e   :  { %v46_v20 = vrot.slane %v32_v16, 4  ;;  %v52_v21 = vrot.slane %v33_v17, 4  ;;  %v34_v22 = vrot.slane %v28_v18, 4 }
  0x7f   :  { %v40_v23 = vrot.slane %v29_v19, 4 }
  0x80   :  { %v47_v24 = vadd.f32 %v46_v20, %v32_v16  ;;  %v53_v25 = vadd.f32 %v52_v21, %v33_v17  ;;  %v35_v26 = vadd.f32 %v34_v22, %v28_v18 }
  0x81   :  { %v41_v28 = vadd.f32 %v40_v23, %v29_v19 }
  0x82   :  { %v48_v29 = vrot.slane %v47_v24, 2  ;;  %v54_v30 = vrot.slane %v53_v25, 2  ;;  %v36_v31 = vrot.slane %v35_v26, 2 }
  0x83   :  { %v42_v32 = vrot.slane %v41_v28, 2 }
  0x84   :  { %v55_v34 = vadd.f32 %v54_v30, %v53_v25  ;;  %v37_v35 = vadd.f32 %v36_v31, %v35_v26  ;;  %v49_v36 = vadd.f32 %v48_v29, %v47_v24 }
  0x85   :  { %v43_v38 = vadd.f32 %v42_v32, %v41_v28 }
  0x86   :  { %v50_v39 = vrot.slane %v49_v36, 1  ;;  %v56_v40 = vrot.slane %v55_v34, 1  ;;  %v38_v41 = vrot.slane %v37_v35, 1 }
  0x87   :  { %v44_v42 = vrot.slane %v43_v38, 1 }
  0x88   :  { %v51_v43 = vadd.f32 %v50_v39, %v49_v36  ;;  %v57_v44 = vadd.f32 %v56_v40, %v55_v34  ;;  %v39_v45 = vadd.f32 %v38_v41, %v37_v35 }
  0x89   :  { %v45_v46 = vadd.f32 %v44_v42, %v43_v38 }
  0x8a   :  { %v103_v47 = vsel %vm86_vm2, %v57_v44, 0.0  ;;  %v104_v48 = vsel %vm89_vm3, %v51_v43, 0.0  ;;  %v87_v49 = vsel %vm83_vm4, %v39_v45, 0.0 }
  0x8b   :  { %v105_v50 = vsel %vm89_vm3, %v103_v47, 0.0  ;;  %v88_v51 = vsel %vm84_vm5, %v45_v46, 0.0  ;;  %v90_v52 = vsel %vm89_vm3, %v87_v49, 0.0 }
  0x8c   :  { %v106_v53 = vadd.f32 %v105_v50, %v104_v48  ;;  %v91_v54 = vsel %vm89_vm3, %v88_v51, 0.0 }
  0x8d   :  { %v92_v55 = vadd.f32 %v91_v54, %v90_v52 }
  0x8e   :  { %107 = vadd.xlane.f32.xlu1 %v106_v53 }
  0x8f   :  { %93 = vadd.xlane.f32.xlu0 %v92_v55 }
 0x11b   :  { %v108_v56 = vpop.xlane.xlu1 %107 }
 0x11c   :  { %v109_v57 = vrot.slane %v108_v56, 4  ;;  %v94_v58 = vpop.xlane.xlu0 %93 }
 0x11d   :  { %v95_v59 = vrot.slane %v94_v58, 4 }
 0x11e   :  { %v110_v60 = vadd.f32 %v109_v57, %v108_v56 }
 0x11f   :  { %v96_v61 = vadd.f32 %v95_v59, %v94_v58 }
 0x120   :  { %v111_v62 = vrot.slane %v110_v60, 2 }
 0x121   :  { %v97_v63 = vrot.slane %v96_v61, 2 }
 0x122   :  { %v112_v0 = vadd.f32 %v111_v62, %v110_v60 }
 0x123   :  { %v98_v1 = vadd.f32 %v97_v63, %v96_v61 }
 0x124   :  { %v113_v2 = vrot.slane %v112_v0, 1 }
 0x125   :  { %v99_v3 = vrot.slane %v98_v1, 1 }
 0x126   :  { %v114_v4 = vadd.f32 %v113_v2, %v112_v0 }
 0x127   :  { %v100_v5 = vadd.f32 %v99_v3, %v98_v1 }
 0x129   :  { %124 = vpush %v100_v5 }
 0x12a   :  { %126 = vpush %v114_v4 }
 0x15a   :  { %s125_s0 = spop %124 }
 0x15b   :  { %v116_v6 = vstv %s125_s0  ;;  %s127_s12 = spop %126 }
 0x15c   :  { %117 = vst [vmem:[%s155_s1] sm:$0x1] %v116_v6  ;;  %v118_v7 = vstv %s127_s12 }
 0x15d   :  { %119 = vst [vmem:[%s155_s1 + $0x1] sm:$0x1] %v118_v7 }

</bundles_post_ra>
